<compile_context>
chip_gen: v5e
topology: v5e:2x2
jax: 0.10.0
libtpu: 0.0.40
codegen_flags: <defaults>
</compile_context>

<pallas_src>
import functools

import jax
import jax.numpy as jnp
from jax.experimental import pallas as pl
from jax.experimental.pallas import tpu as pltpu


def _round_up(v, m):
    return (v + m - 1) // m * m


def _tcl_kernel(x_ref, lab_ref, cent_t_ref, cn2_ref, dn2_ref, out_ref,
                *, batch_size, block_b):
    pid = pl.program_id(0)
    tb = x_ref.shape[0]
    n_pad = cent_t_ref.shape[1]

    x = x_ref[...]                                       # (TB, D)  f32 or bf16
    xf = x.astype(jnp.float32)
    lab = lab_ref[...]                                   # (TB, 1)  i32

    # Single MXU matmul in canonical (M,K)x(K,N) form: logits[b,n] = x_b . c_n.
    logits = jnp.dot(x, cent_t_ref[...],
                     preferred_element_type=jnp.float32)  # (TB, n_pad) f32

    # One-hot mask via broadcast compare (no (TB,N) int temporary).
    col_ids = jax.lax.broadcasted_iota(jnp.int32, (1, n_pad), 1)
    onehot_b = lab == col_ids                             # (TB, n_pad) bool

    # x.c_label and x.(c_sum - c_label) derived from logits alone
    # (padded centroid columns are all-zero -> contribute 0 to the row sum).
    dot_inner = jnp.sum(jnp.where(onehot_b, logits, 0.0), axis=1, keepdims=True)
    x_dot_csum = jnp.sum(logits, axis=1, keepdims=True)
    dot_outer = x_dot_csum - dot_inner

    # Per-sample centroid scalars: VPU select + lane reduce on resident rows.
    clab_norm2 = jnp.sum(jnp.where(onehot_b, cn2_ref[...], 0.0),
                         axis=1, keepdims=True)           # |c_lab|^2        (TB,1)
    diff_norm2 = jnp.sum(jnp.where(onehot_b, dn2_ref[...], 0.0),
                         axis=1, keepdims=True)           # |c_sum - c_lab|^2 (TB,1)

    x_norm2 = jnp.sum(xf * xf, axis=1, keepdims=True)     # (TB, 1)

    # Cosine terms via fused rsqrt of squared norms (EUP; no sqrt / divide).
    inner = 1.0 - dot_inner * jax.lax.rsqrt(x_norm2 * clab_norm2)
    outer = dot_outer * jax.lax.rsqrt(x_norm2 * diff_norm2)

    # Mask ragged-edge rows (global row index >= batch_size).  Select-based
    # masking is NaN/Inf safe for garbage rows of a partial edge block.
    row_ids = pid * block_b + jax.lax.broadcasted_iota(jnp.int32, (tb, 1), 0)
    per_row = jnp.where(row_ids < batch_size, inner + outer, 0.0)

    partial = jnp.sum(per_row)                            # f32 scalar
    # Lane/sublane-aligned (1, 8, 128) partial-sum tile; reduced in JAX.
    out_ref[...] = jnp.broadcast_to(partial, out_ref.shape).astype(jnp.float32)


def triplet_center_loss(x, label, centroids, *, block_b=None,
                        vmem_limit_bytes=48 << 20):
    """x: (B, D), label: (B,) int, centroids: (N, D) -> scalar f32 loss."""
    B, D = x.shape
    N, Dc = centroids.shape
    assert D == Dc, "feature dims must match"

    # Keep bf16 inputs in bf16 (halves HBM read); everything else -> f32.
    if x.dtype not in (jnp.bfloat16, jnp.float32):
        x = x.astype(jnp.float32)
    compute_dtype = x.dtype
    x_bytes = jnp.dtype(compute_dtype).itemsize

    # Class dim: lane-dense when large, sublane-aligned when small.
    n_pad = _round_up(N, 128) if N >= 128 else _round_up(max(N, 1), 8)

    # ---- O(N*D) centroid statistics, computed once on the host side --------
    cent_f = centroids.astype(jnp.float32)
    c_sum = jnp.sum(cent_f, axis=0, keepdims=True)                   # (1, D)
    cnorm2 = jnp.sum(cent_f * cent_f, axis=1)                        # (N,)
    diff = c_sum - cent_f                                            # (N, D)
    diffnorm2 = jnp.sum(diff * diff, axis=1)                         # (N,) exact, >= 0
    cn2_row = jnp.zeros((1, n_pad), jnp.float32).at[0, :N].set(cnorm2)
    dn2_row = jnp.zeros((1, n_pad), jnp.float32).at[0, :N].set(diffnorm2)
    # Pre-transposed, zero-padded centroids -> canonical MXU RHS (D, n_pad).
    cent_t = jnp.zeros((D, n_pad), compute_dtype).at[:, :N].set(
        cent_f.T.astype(compute_dtype))

    # ---- batch tile: aim for multi-MiB x tiles under the scoped-VMEM limit -
    if block_b is None:
        budget = 24 << 20                                            # x double-buffer + temps
        per_row = 2 * D * x_bytes + 4 * n_pad * 4 + 64
        block_b = max(8, min(8192, budget // per_row))
    block_b = min(block_b, _round_up(B, 8))
    block_b = max(8, (block_b // 8) * 8)

    grid_b = pl.cdiv(B, block_b)
    grid = (grid_b,)

    lab2d = label.astype(jnp.int32).reshape(B, 1)

    kernel = functools.partial(_tcl_kernel, batch_size=B, block_b=block_b)

    partials = pl.pallas_call(
        kernel,
        out_shape=jax.ShapeDtypeStruct((grid_b, 8, 128), jnp.float32),
        grid_spec=pltpu.PrefetchScalarGridSpec(
            num_scalar_prefetch=0,
            grid=grid,
            in_specs=[
                pl.BlockSpec((block_b, D), lambda i: (i, 0)),    # x tile (pipelined)
                pl.BlockSpec((block_b, 1), lambda i: (i, 0)),    # labels tile
                pl.BlockSpec((D, n_pad), lambda i: (0, 0)),      # centroids^T (resident)
                pl.BlockSpec((1, n_pad), lambda i: (0, 0)),      # |c_n|^2 row (resident)
                pl.BlockSpec((1, n_pad), lambda i: (0, 0)),      # |c_sum-c_n|^2 row (resident)
            ],
            out_specs=pl.BlockSpec((1, 8, 128), lambda i: (i, 0, 0)),
        ),
        compiler_params=pltpu.CompilerParams(
            dimension_semantics=("parallel",),
            vmem_limit_bytes=vmem_limit_bytes,
        ),
    )(x, lab2d, cent_t, cn2_row, dn2_row)

    # Final reduction + mean outside the kernel (tiny, numerically safer,
    # keeps the grid embarrassingly parallel for dual-TC chips).
    return jnp.sum(partials[:, 0, 0]) / B


def _reference(x, label, centroids):
    # Pure-JAX reference mirroring the PyTorch code.
    x = x.astype(jnp.float32)
    centroids = centroids.astype(jnp.float32)
    c_lab = jnp.take(centroids, label, axis=0)
    x_norm = jnp.linalg.norm(x, axis=1)
    inner = 1.0 - jnp.einsum('ij,ij->i', x, c_lab) / (
        x_norm * jnp.linalg.norm(c_lab, axis=1))
    c_sum = jnp.sum(centroids, axis=0)[None, :]
    diff = c_sum - c_lab
    outer = jnp.einsum('ij,ij->i', x, diff) / (
        x_norm * jnp.linalg.norm(diff, axis=1))
    return jnp.mean(inner + outer)


if __name__ == "__main__":
    key = jax.random.PRNGKey(0)
    k1, k2, k3 = jax.random.split(key, 3)

    B, N, D = 16, 6, 32
    x = jax.random.normal(k1, (B, D), dtype=jnp.float32)
    centroids = jax.random.normal(k2, (N, D), dtype=jnp.float32)
    label = jax.random.randint(k3, (B,), 0, N, dtype=jnp.int32)

    loss = triplet_center_loss(x, label, centroids)
    jax.block_until_ready(loss)

    ref = _reference(x, label, centroids)
    assert jnp.allclose(loss, ref, atol=1e-4, rtol=1e-4), (loss, ref)

    print("KERNEL_OK")
</pallas_src>

<mosaic_0001>
module attributes {stable_mosaic.version = 11 : i64} {
  func.func @_tcl_kernel(%arg0: i32, %arg1: memref<16x32xf32, #tpu.memory_space<vmem>>, %arg2: memref<16x1xi32, #tpu.memory_space<vmem>>, %arg3: memref<32x8xf32, #tpu.memory_space<vmem>>, %arg4: memref<1x8xf32, #tpu.memory_space<vmem>>, %arg5: memref<1x8xf32, #tpu.memory_space<vmem>>, %arg6: memref<1x8x128xf32, #tpu.memory_space<vmem>>) attributes {dimension_semantics = [#tpu.dimension_semantics<parallel>], iteration_bounds = array<i64: 1>, scalar_prefetch = 0 : i64, scratch_operands = 0 : i64, tpu.core_type = #tpu.core_type<tc>, window_params = [{transform_indices = @transform_0, window_bounds = array<i64: 16, 32>}, {transform_indices = @transform_1, window_bounds = array<i64: 16, 1>}, {pipeline_mode = #tpu.pipeline_mode<synchronous>, transform_indices = @transform_2, window_bounds = array<i64: 32, 8>}, {pipeline_mode = #tpu.pipeline_mode<synchronous>, transform_indices = @transform_3, window_bounds = array<i64: 1, 8>}, {pipeline_mode = #tpu.pipeline_mode<synchronous>, transform_indices = @transform_4, window_bounds = array<i64: 1, 8>}, {transform_indices = @transform_5, window_bounds = array<i64: 1, 8, 128>}]} {
    %c0 = arith.constant 0 : index
    %c0_0 = arith.constant 0 : index
    %0 = vector.load %arg1[%c0, %c0_0] : memref<16x32xf32, #tpu.memory_space<vmem>>, vector<16x32xf32>
    %c0_1 = arith.constant 0 : index
    %c0_2 = arith.constant 0 : index
    %1 = vector.load %arg2[%c0_1, %c0_2] : memref<16x1xi32, #tpu.memory_space<vmem>>, vector<16x1xi32>
    %c0_3 = arith.constant 0 : index
    %c0_4 = arith.constant 0 : index
    %2 = vector.load %arg3[%c0_3, %c0_4] : memref<32x8xf32, #tpu.memory_space<vmem>>, vector<32x8xf32>
    %cst = arith.constant dense<0.000000e+00> : vector<16x8xf32>
    %3 = tpu.matmul %0, %2, %cst {dimension_numbers = #tpu.dot_dimension_numbers<[1], [0], [0], [1], [0, 0, 1, 1], [], []>} : vector<16x32xf32>, vector<32x8xf32>, vector<16x8xf32> -> vector<16x8xf32>
    %4 = tpu.iota {dimensions = array<i32: 1>} : vector<1x8xi32>
    %5 = vector.broadcast %1 : vector<16x1xi32> to vector<16x8xi32>
    %6 = vector.broadcast %4 : vector<1x8xi32> to vector<16x8xi32>
    %7 = arith.cmpi eq, %5, %6 : vector<16x8xi32>
    %cst_5 = arith.constant 0.000000e+00 : f32
    %8 = vector.broadcast %cst_5 : f32 to vector<16x8xf32>
    %9 = arith.select %7, %3, %8 : vector<16x8xi1>, vector<16x8xf32>
    %cst_6 = arith.constant dense<0.000000e+00> : vector<16xf32>
    %10 = vector.multi_reduction <add>, %9, %cst_6 [1] : vector<16x8xf32> to vector<16xf32>
    %11 = vector.shape_cast %10 : vector<16xf32> to vector<16x1xf32>
    %cst_7 = arith.constant dense<0.000000e+00> : vector<16xf32>
    %12 = vector.multi_reduction <add>, %3, %cst_7 [1] : vector<16x8xf32> to vector<16xf32>
    %13 = vector.shape_cast %12 : vector<16xf32> to vector<16x1xf32>
    %14 = arith.subf %13, %11 : vector<16x1xf32>
    %c0_8 = arith.constant 0 : index
    %c0_9 = arith.constant 0 : index
    %15 = vector.load %arg4[%c0_8, %c0_9] : memref<1x8xf32, #tpu.memory_space<vmem>>, vector<1x8xf32>
    %cst_10 = arith.constant 0.000000e+00 : f32
    %16 = vector.shape_cast %15 : vector<1x8xf32> to vector<1x8xf32>
    %17 = vector.broadcast %16 : vector<1x8xf32> to vector<16x8xf32>
    %18 = vector.broadcast %cst_10 : f32 to vector<16x8xf32>
    %19 = arith.select %7, %17, %18 : vector<16x8xi1>, vector<16x8xf32>
    %cst_11 = arith.constant dense<0.000000e+00> : vector<16xf32>
    %20 = vector.multi_reduction <add>, %19, %cst_11 [1] : vector<16x8xf32> to vector<16xf32>
    %21 = vector.shape_cast %20 : vector<16xf32> to vector<16x1xf32>
    %c0_12 = arith.constant 0 : index
    %c0_13 = arith.constant 0 : index
    %22 = vector.load %arg5[%c0_12, %c0_13] : memref<1x8xf32, #tpu.memory_space<vmem>>, vector<1x8xf32>
    %cst_14 = arith.constant 0.000000e+00 : f32
    %23 = vector.shape_cast %22 : vector<1x8xf32> to vector<1x8xf32>
    %24 = vector.broadcast %23 : vector<1x8xf32> to vector<16x8xf32>
    %25 = vector.broadcast %cst_14 : f32 to vector<16x8xf32>
    %26 = arith.select %7, %24, %25 : vector<16x8xi1>, vector<16x8xf32>
    %cst_15 = arith.constant dense<0.000000e+00> : vector<16xf32>
    %27 = vector.multi_reduction <add>, %26, %cst_15 [1] : vector<16x8xf32> to vector<16xf32>
    %28 = vector.shape_cast %27 : vector<16xf32> to vector<16x1xf32>
    %29 = arith.mulf %0, %0 : vector<16x32xf32>
    %cst_16 = arith.constant dense<0.000000e+00> : vector<16xf32>
    %30 = vector.multi_reduction <add>, %29, %cst_16 [1] : vector<16x32xf32> to vector<16xf32>
    %31 = vector.shape_cast %30 : vector<16xf32> to vector<16x1xf32>
    %32 = arith.mulf %31, %21 : vector<16x1xf32>
    %33 = math.rsqrt %32 : vector<16x1xf32>
    %34 = arith.mulf %11, %33 : vector<16x1xf32>
    %cst_17 = arith.constant 1.000000e+00 : f32
    %35 = vector.broadcast %cst_17 : f32 to vector<16x1xf32>
    %36 = arith.subf %35, %34 : vector<16x1xf32>
    %37 = arith.mulf %31, %28 : vector<16x1xf32>
    %38 = math.rsqrt %37 : vector<16x1xf32>
    %39 = arith.mulf %14, %38 : vector<16x1xf32>
    %c16_i32 = arith.constant 16 : i32
    %40 = arith.muli %arg0, %c16_i32 : i32
    %41 = tpu.iota {dimensions = array<i32: 0>} : vector<16x1xi32>
    %42 = vector.broadcast %40 : i32 to vector<16x1xi32>
    %43 = arith.addi %42, %41 : vector<16x1xi32>
    %c16_i32_18 = arith.constant 16 : i32
    %44 = vector.broadcast %c16_i32_18 : i32 to vector<16x1xi32>
    %45 = arith.cmpi slt, %43, %44 : vector<16x1xi32>
    %46 = arith.addf %36, %39 : vector<16x1xf32>
    %cst_19 = arith.constant 0.000000e+00 : f32
    %47 = vector.broadcast %cst_19 : f32 to vector<16x1xf32>
    %48 = arith.select %45, %46, %47 : vector<16x1xi1>, vector<16x1xf32>
    %49 = vector.shape_cast %48 : vector<16x1xf32> to vector<1x16x1xf32>
    %cst_20 = arith.constant dense<0.000000e+00> : vector<1xf32>
    %50 = vector.multi_reduction <add>, %49, %cst_20 [1, 2] : vector<1x16x1xf32> to vector<1xf32>
    %51 = vector.shape_cast %50 : vector<1xf32> to vector<1x1x1xf32>
    %52 = vector.extract %51[0, 0, 0] : f32 from vector<1x1x1xf32>
    %53 = vector.broadcast %52 : f32 to vector<1x8x128xf32>
    %c0_21 = arith.constant 0 : index
    %c0_22 = arith.constant 0 : index
    %c0_23 = arith.constant 0 : index
    %54 = vector.load %arg6[%c0_21, %c0_22, %c0_23] : memref<1x8x128xf32, #tpu.memory_space<vmem>>, vector<1x8x128xf32>
    tpu.vector_store %arg6[%c0_21, %c0_22, %c0_23], %53 {strides = array<i32>} : memref<1x8x128xf32, #tpu.memory_space<vmem>>, vector<1x8x128xf32>,
    return
  }
  func.func @transform_0(%arg0: i32) -> (i32, i32) {
    %c0_i32 = arith.constant 0 : i32
    %c0_i32_0 = arith.constant 0 : i32
    return %arg0, %c0_i32 : i32, i32
  }
  func.func @transform_1(%arg0: i32) -> (i32, i32) {
    %c0_i32 = arith.constant 0 : i32
    %c0_i32_0 = arith.constant 0 : i32
    return %arg0, %c0_i32 : i32, i32
  }
  func.func @transform_2(%arg0: i32) -> (i32, i32) {
    %c0_i32 = arith.constant 0 : i32
    %c0_i32_0 = arith.constant 0 : i32
    %c0_i32_1 = arith.constant 0 : i32
    return %c0_i32, %c0_i32_0 : i32, i32
  }
  func.func @transform_3(%arg0: i32) -> (i32, i32) {
    %c0_i32 = arith.constant 0 : i32
    %c0_i32_0 = arith.constant 0 : i32
    %c0_i32_1 = arith.constant 0 : i32
    return %c0_i32, %c0_i32_0 : i32, i32
  }
  func.func @transform_4(%arg0: i32) -> (i32, i32) {
    %c0_i32 = arith.constant 0 : i32
    %c0_i32_0 = arith.constant 0 : i32
    %c0_i32_1 = arith.constant 0 : i32
    return %c0_i32, %c0_i32_0 : i32, i32
  }
  func.func @transform_5(%arg0: i32) -> (i32, i32, i32) {
    %c0_i32 = arith.constant 0 : i32
    %c0_i32_0 = arith.constant 0 : i32
    %c0_i32_1 = arith.constant 0 : i32
    return %arg0, %c0_i32, %c0_i32_0 : i32, i32, i32
  }
}

</mosaic_0001>

<bundles_post_ra>
// kernel: tpu_custom_call.1
= control target key start
LH: loop header
LB: loop body
LE: loop exit
PB: predicated region body
PF: predicated region fallthrough
CT: control target
= control target key end

     0   :  { %v259_v3 = vmov 0   ;;  %s332_s0 = inlined_call_operand.vmem [shape: f32[16,32], index: 0, kind: input, shape index: {}]   ;;  %s333_s1 = inlined_call_operand.vmem [shape: s32[16,1], index: 1, kind: input, shape index: {}]   ;;  %s334_s2 = inlined_call_operand.vmem [shape: f32[32,8], index: 2, kind: input, shape index: {}]   ;;  %s335_s3 = inlined_call_operand.vmem [shape: f32[1,8], index: 3, kind: input, shape index: {}]   ;;  %s336_s4 = inlined_call_operand.vmem [shape: f32[1,8], index: 4, kind: input, shape index: {}]   ;;  %s337_s5 = inlined_call_operand.hbm [shape: f32[1,8,128], index: 5, kind: output, shape index: {}]  }
   0x1   :  { %v28_v0 = vld [vmem:[%s334_s2 + $0x18] sm:$0xff]  ;;  %v23_v1 = vld [vmem:[%s333_s1] sm:$0xff]  ;;  %v27_v2 = vld [vmem:[%s334_s2 + $0x10] sm:$0xff]  ;;  %222 = vset.pattern.permute.xlu0 %v259_v3 }
   0x2   :  { %48 = vmatpush.msra.mxu0 %v28_v0  ;;  %214 = vmatpush.msra.mxu1 %v28_v0  ;;  %v26_v4 = vld [vmem:[%s334_s2 + $0x8] sm:$0xff] }
   0x3   :  { %62 = vperm.xlu0 %222, %v23_v1  }
   0x4   :  { %49 = vmatpush.msra.mxu0 %v27_v2 }
   0x5   :  { %10 = vsyncpa [#allocation3], 0  ;;  %215 = vmatpush.msra.mxu1 %v27_v2  ;;  %v25_v5 = vld [vmem:[%s334_s2] sm:$0xff]  ;;  %vm29_vm0 = vcmask 261120   ;;  %v22_v7 = vld [vmem:[%s332_s0 + $0x8] sm:$0xff]  ;;  %v59_v13 = vlaneseq  ;;  %vm71_vm1 = vcmask 64512  }
   0x6   :  { %50 = vmatpush.msra.mxu0 %v26_v4  ;;  %v21_v6 = vld [vmem:[%s332_s0] sm:$0xff]  ;;  %v24_v8 = vld [vmem:[%s333_s1 + $0x8] sm:$0xff]  ;;  %v111_v11 = vmul.f32 %v22_v7, %v22_v7  ;;  %s260_s1 = smov [#allocation2]   ;;  %s203_s12 = sshll.u32 %s337_s5, 4  ;;  %s204_s12 = int_to_ptr.hbm [resolvable:$true] %s203_s12 }
   0x7   :  { %216 = vmatpush.msra.mxu1 %v26_v4  ;;  %v110_v9 = vmul.f32 %v21_v6, %v21_v6  ;;  %v60_v14 = vand.u32 127, %v59_v13  ;;  %v223_v15 = vld [vmem:[%s336_s4] ss:$0 sm:$0xff] }
   0x8   :  { %51 = vmatpush.msra.mxu0 %v25_v5  ;;  %v115_v12 = vsel %vm29_vm0, %v111_v11, 0.0  ;;  %v224_v16 = vld [vmem:[%s335_s3] ss:$0 sm:$0xff]  ;;  %s201_s3 = sshll.u32 %s260_s1, 4  ;;  %s202_s3 = int_to_ptr.vmem [resolvable:$true] %s201_s3 }
   0x9   :  { %217 = vmatpush.msra.mxu1 %v25_v5  ;;  %212 = vmatmul.msk.f32.vlgmr.msra.gmra.mxu0 %vm29_vm0, %v21_v6  ;;  %v112_v10 = vsel %vm29_vm0, %v110_v9, 0.0 }
   0xa   :  { %213 = vmatmul.msk.f32.vlgmr.msra.gmra.mxu1 %vm29_vm0, %v22_v7  ;;  %113 = vadd.xlane.f32.xlu2 %v112_v10  ;;  %vm181_vm0 = vcmask 7168  }
   0xb   :  { %65 = vperm.xlu0 %222, %v24_v8  }
  0x12   :  { %116 = vadd.xlane.f32.xlu2 %v115_v12 }
  0x75   :  { %v63_v17 = vpop.permute.xlu0 %62 }
  0x76   :  { %vm67_vm2 = vcmp.eq.s32.totalorder %v63_v17, %v60_v14 }
  0x77   :  { %v102_v18 = vsel %vm67_vm2, %v223_v15, 0.0  ;;  %v90_v19 = vsel %vm67_vm2, %v224_v16, 0.0 }
  0x78   :  { %v104_v20 = vsel %vm71_vm1, %v102_v18, 0.0  ;;  %v92_v21 = vsel %vm71_vm1, %v90_v19, 0.0 }
  0x79   :  { %105 = vadd.xlane.f32.xlu0 %v104_v20  ;;  %93 = vadd.xlane.f32.xlu1 %v92_v21 }
  0x7d   :  { %v66_v22 = vpop.permute.xlu0 %65  ;;  %v114_v35 = vpop.xlane.xlu2 %113 }
  0x7e   :  { %vm68_vm3 = vcmp.eq.s32.totalorder %v66_v22, %v60_v14 }
  0x7f   :  { %v91_v23 = vsel %vm68_vm3, %v224_v16, 0.0  ;;  %v103_v25 = vsel %vm68_vm3, %v223_v15, 0.0 }
  0x80   :  { %v95_v24 = vsel %vm71_vm1, %v91_v23, 0.0  ;;  %v107_v28 = vsel %vm71_vm1, %v103_v25, 0.0 }
  0x81   :  { %96 = vadd.xlane.f32.xlu1 %v95_v24 }
  0x85   :  { %v117_v40 = vpop.xlane.xlu2 %116 }
  0x86   :  { %v53_v26 = vpop.f32.mrf.mxu0 }
  0x87   :  { %v69_v27 = vsel %vm67_vm2, %v53_v26, 0.0  ;;  %v56_v30 = vpop.f32.mrf.mxu1  ;;  %v78_v32 = vsel %vm71_vm1, %v53_v26, 0.0 }
  0x88   :  { %v72_v29 = vsel %vm71_vm1, %v69_v27, 0.0  ;;  %v70_v31 = vsel %vm68_vm3, %v56_v30, 0.0  ;;  %v81_v34 = vsel %vm71_vm1, %v56_v30, 0.0 }
  0x89   :  { %108 = vadd.xlane.f32.xlu1 %v107_v28  ;;  %73 = vadd.xlane.f32.xlu2 %v72_v29  ;;  %v75_v33 = vsel %vm71_vm1, %v70_v31, 0.0 }
  0x91   :  { %76 = vadd.xlane.f32.xlu1 %v75_v33  ;;  %79 = vadd.xlane.f32.xlu2 %v78_v32 }
  0x99   :  { %82 = vadd.xlane.f32.xlu1 %v81_v34 }
  0xec   :  { %v94_v36 = vpop.xlane.xlu1 %93  ;;  %v106_v37 = vpop.xlane.xlu0 %105 }
  0xed   :  { %v118_v38 = vmul.f32 %v114_v35, %v94_v36  ;;  %v144_v39 = vmul.f32 %v114_v35, %v106_v37 }
  0xef   :  { %225 = vrsqrt.f32 %v118_v38  ;;  %vm126_vm5 = vweird.f32 %v118_v38  ;;  %vm152_vm11 = vweird.f32 %v144_v39 }
  0xf0   :  { %227 = vrsqrt.f32 %v144_v39 }
  0xf4   :  { %v97_v41 = vpop.xlane.xlu1 %96 }
  0xf5   :  { %v226_v42 = vpop.eup %225  ;;  %v119_v43 = vmul.f32 %v117_v40, %v97_v41 }
  0xf6   :  { %v228_v44 = vpop.eup %227  ;;  %v121_v45 = vmul.f32 %v226_v42, %v118_v38  ;;  %vm127_vm4 = vweird.f32 %v226_v42 }
  0xf7   :  { %229 = vrsqrt.f32 %v119_v43  ;;  %v147_v47 = vmul.f32 %v228_v44, %v144_v39  ;;  %vm128_vm7 = vmor %vm126_vm5, %vm127_vm4  ;;  %vm136_vm8 = vweird.f32 %v119_v43  ;;  %vm153_vm9 = vweird.f32 %v228_v44 }
  0xf8   :  { %v122_v46 = vmul.f32 %v226_v42, %v121_v45  ;;  %vm154_vm12 = vmor %vm152_vm11, %vm153_vm9 }
  0xf9   :  { %v148_v49 = vmul.f32 %v228_v44, %v147_v47 }
  0xfa   :  { %v123_v48 = vmul.f32 0.5, %v122_v46 }
  0xfb   :  { %v149_v55 = vmul.f32 0.5, %v148_v49 }
  0xfc   :  { %v109_v50 = vpop.xlane.xlu1 %108  ;;  %v74_v51 = vpop.xlane.xlu2 %73  ;;  %v124_v57 = vsub.f32 1.5, %v123_v48 }
  0xfd   :  { %v230_v52 = vpop.eup %229  ;;  %v145_v53 = vmul.f32 %v117_v40, %v109_v50  ;;  %v150_v59 = vsub.f32 1.5, %v149_v55 }
  0xfe   :  { %v131_v54 = vmul.f32 %v230_v52, %v119_v43  ;;  %v125_v60 = vmul.f32 %v226_v42, %v124_v57  ;;  %vm137_vm6 = vweird.f32 %v230_v52 }
  0xff   :  { %231 = vrsqrt.f32 %v145_v53  ;;  %v151_v5 = vmul.f32 %v228_v44, %v150_v59  ;;  %vm138_vm10 = vmor %vm136_vm8, %vm137_vm6  ;;  %vm162_vm14 = vweird.f32 %v145_v53 }
 0x100   :  { %v132_v56 = vmul.f32 %v230_v52, %v131_v54  ;;  %v129_v4 = vsel %vm128_vm7, %v226_v42, %v125_v60 }
 0x101   :  { %v140_v9 = vmul.f32 %v129_v4, %v74_v51  ;;  %v155_v11 = vsel %vm154_vm12, %v228_v44, %v151_v5 }
 0x102   :  { %v133_v58 = vmul.f32 0.5, %v132_v56 }
 0x103   :  { %v142_v16 = vsub.f32 1.0, %v140_v9 }
 0x104   :  { %v77_v61 = vpop.xlane.xlu1 %76  ;;  %v134_v62 = vsub.f32 1.5, %v133_v58  ;;  %v80_v2 = vpop.xlane.xlu2 %79 }
 0x105   :  { %v232_v63 = vpop.eup %231  ;;  %v84_v6 = vsub.f32 %v80_v2, %v74_v51 }
 0x106   :  { %v157_v0 = vmul.f32 %v232_v63, %v145_v53  ;;  %v135_v1 = vmul.f32 %v230_v52, %v134_v62  ;;  %vm163_vm13 = vweird.f32 %v232_v63 }
 0x107   :  { %v166_v14 = vmul.f32 %v155_v11, %v84_v6  ;;  %vm164_vm15 = vmor %vm162_vm14, %vm163_vm13 }
 0x108   :  { %v158_v3 = vmul.f32 %v232_v63, %v157_v0  ;;  %v139_v8 = vsel %vm138_vm10, %v230_v52, %v135_v1 }
 0x109   :  { %v141_v13 = vmul.f32 %v139_v8, %v77_v61  ;;  %v177_v21 = vadd.f32 %v166_v14, %v142_v16 }
 0x10a   :  { %v159_v7 = vmul.f32 0.5, %v158_v3 }
 0x10b   :  { %v143_v19 = vsub.f32 1.0, %v141_v13  ;;  %v182_v23 = vsel %vm181_vm0, %v177_v21, 0.0 }
 0x10c   :  { %v160_v10 = vsub.f32 1.5, %v159_v7  ;;  %v83_v12 = vpop.xlane.xlu1 %82 }
 0x10d   :  { %v85_v17 = vsub.f32 %v83_v12, %v77_v61 }
 0x10e   :  { %v161_v15 = vmul.f32 %v232_v63, %v160_v10 }
 0x110   :  { %v165_v18 = vsel %vm164_vm15, %v232_v63, %v161_v15 }
 0x111   :  { %v167_v20 = vmul.f32 %v165_v18, %v85_v17 }
 0x113   :  { %v178_v22 = vadd.f32 %v167_v20, %v143_v19 }
 0x115   :  { %v183_v24 = vsel %vm181_vm0, %v178_v22, 0.0 }
 0x116   :  { %v184_v25 = vadd.f32 %v183_v24, %v182_v23 }
 0x118   :  { %185 = vadd.xlane.f32.xlu2 %v184_v25 }
 0x18b   :  { %v186_v26 = vpop.xlane.xlu2 %185 }
 0x18c   :  { %v187_v27 = vrot.slane %v186_v26, 4 }
 0x18e   :  { %v188_v28 = vadd.f32 %v187_v27, %v186_v26 }
 0x190   :  { %v189_v29 = vrot.slane %v188_v28, 2 }
 0x192   :  { %v190_v30 = vadd.f32 %v189_v29, %v188_v28 }
 0x194   :  { %v191_v31 = vrot.slane %v190_v30, 1 }
 0x196   :  { %v192_v32 = vadd.f32 %v191_v31, %v190_v30 }
 0x198   :  { %218 = vpush %v192_v32 }
 0x1c9   :  { %s219_s13 = spop %218 }
 0x1ca   :  { %v194_v33 = vstv %s219_s13 }
 0x1cb   :  { %195 = vst [vmem:[#allocation2] sm:$0xff] %v194_v33 }
 0x1cc   :  { %206 = dma.vmem_to_hbm [thread:$0]  %s202_s3, 128, %s204_s12, [#allocation3]  }
 0x1cd   :  { %257 = dma.done.wait [#allocation3], 128  }
 0x1ce   :  { %258 = vsyncadd [#allocation3], 4294967168 }
 0x1cf   :  { %211 = vsyncpa [#allocation3], 1 }

</bundles_post_ra>
